<compile_context>
chip_gen: v7x
topology: tpu7x:2x2x1
jax: 0.10.0
libtpu: 0.0.40
codegen_flags: <defaults>
</compile_context>

<pallas_src>
import functools

import jax
import jax.numpy as jnp
from jax.experimental import pallas as pl
from jax.experimental.pallas import tpu as pltpu


def _round_up(x, m):
    return (x + m - 1) // m * m


def _lane_fold(n_classes, bin_len):
    """Smallest power-of-two fold with fold*C % 128 == 0 that divides bin_len."""
    f = 1
    while (f * n_classes) % 128 != 0:
        f *= 2
    return f if bin_len % f == 0 else 1


def _pick_b_tile(B, max_tile=32):
    """Batch rows per block.

    Output-tile rule: the batch block must be a multiple of 8 or the full
    batch.  Prefer >= 2 blocks (v7x megacore) with an even block count.
    """
    cands = [t for t in range(8, min(B, max_tile + 1), 8) if B % t == 0]
    if not cands:
        return B
    even = [t for t in cands if (B // t) % 2 == 0]
    return max(even if even else cands)


def _pick_r_chunk(r_per, bytes_per_bin, budget_bytes):
    """Largest divisor of r_per whose input block fits the byte budget."""
    best = 1
    for d in range(1, r_per + 1):
        if r_per % d == 0 and d * bytes_per_bin <= budget_bytes:
            best = d
    return best


# ---------------------------------------------------------------------------
# Kernel
# ---------------------------------------------------------------------------
def _hipool_kernel(y_ref, out_ref, acc_ref, *, n_classes, fold):
    """One step of the bin reduction.

    y_ref:   (b_tile, r_chunk, bin_len // fold, fold * n_classes)  input dtype
    out_ref: (b_tile, n_classes) float32 partial sum of bin maxima
    acc_ref: (b_tile, n_classes) float32 scratch, persists across grid axis 2
    """
    r_step = pl.program_id(2)

    @pl.when(r_step == 0)
    def _init():
        acc_ref[...] = jnp.zeros_like(acc_ref)

    x = y_ref[...]                       # native dtype: max is exact in bf16
    m = jnp.max(x, axis=2)               # sublane reduce -> (b, rc, fold*C)

    # Halving tree over the `fold` lane groups of width C (depth log2(fold),
    # bounded regardless of bin_len since the sublane reduce ran first).
    f = fold
    while f > 1:
        half = (f // 2) * n_classes
        m = jnp.maximum(m[:, :, :half], m[:, :, half:])
        f //= 2

    # m: (b_tile, r_chunk, C) bin maxima; accumulate in float32.
    acc_ref[...] += jnp.sum(m.astype(jnp.float32), axis=1)

    @pl.when(r_step == pl.num_programs(2) - 1)
    def _finalize():
        out_ref[...] = acc_ref[...]


# ---------------------------------------------------------------------------
# Wrapper
# ---------------------------------------------------------------------------
def hipool_fixed_forward(y_frame, seq_len, n_classes, R, *,
                         block_budget_bytes=8 * 1024 * 1024):
    """Pallas TPU implementation of HiPoolFixed.forward.  Returns float32 (B, C)."""
    B, S, C = y_frame.shape
    assert S == seq_len and C == n_classes
    assert seq_len % R == 0, "R must divide seq_len (R comes from n_star)"
    bin_len = seq_len // R
    itemsize = y_frame.dtype.itemsize

    # Lane-dense folding: put `fold` bin elements on the lane axis so DMA and
    # VPU rows are 128-lane dense even for small n_classes.
    fold = _lane_fold(C, bin_len)
    G, W = bin_len // fold, fold * C

    # Batch tiling / parallel-axis setup.
    b_tile = _pick_b_tile(B)
    batch_blocks = B // b_tile
    # If the batch gives only one parallel block, split the bin reduction into
    # two independent partial sums (combined below) so both v7x cores get work.
    n_split = 2 if (batch_blocks == 1 and R % 2 == 0 and R >= 2) else 1
    r_per = R // n_split

    # Bins per grid step, sized purely from the byte budget (no arbitrary cap).
    sub_mult = max(8, 32 // itemsize)            # sublane packing: 8/16/32
    bytes_per_bin = (b_tile * _round_up(G, sub_mult)
                     * _round_up(W, 128) * itemsize)
    r_chunk = _pick_r_chunk(r_per, bytes_per_bin, block_budget_bytes)
    steps = r_per // r_chunk
    block_bytes = r_chunk * bytes_per_bin

    # Scoped-VMEM limit: cover the double-buffered block, stay within
    # 32-48 MiB (above v5e's 16 MiB default, headroom under v7x's 64 MiB).
    vmem_limit = int(max(32 * 2**20,
                         min(48 * 2**20, 2 * block_bytes + 4 * 2**20)))
    vmem_limit = int(max(vmem_limit, 2 * block_bytes + 2 * 2**20))

    grid = (batch_blocks, n_split, steps)
    y_r = y_frame.reshape(B, R, G, W)            # free, contiguous reshape

    steps_const = steps
    in_spec = pl.BlockSpec(
        (b_tile, r_chunk, G, W),
        lambda i, s, r: (i, s * steps_const + r, 0, 0))
    out_spec = pl.BlockSpec((None, b_tile, C), lambda i, s, r: (s, i, 0))

    cost = pl.CostEstimate(
        flops=int(B * S * C + B * R * C),
        transcendentals=0,
        bytes_accessed=int(B * S * C * itemsize + n_split * B * C * 4),
    )

    partials = pl.pallas_call(
        functools.partial(_hipool_kernel, n_classes=C, fold=fold),
        out_shape=jax.ShapeDtypeStruct((n_split, B, C), jnp.float32),
        grid_spec=pltpu.PrefetchScalarGridSpec(
            num_scalar_prefetch=0,
            grid=grid,
            in_specs=[in_spec],
            out_specs=out_spec,
            scratch_shapes=[pltpu.VMEM((b_tile, C), jnp.float32)],
        ),
        compiler_params=pltpu.CompilerParams(
            dimension_semantics=("parallel", "parallel", "arbitrary"),
            vmem_limit_bytes=vmem_limit),
        cost_estimate=cost,
    )(y_r)

    # Combine the partial sums and apply the mean over R bins (tiny XLA op).
    # Matches torch semantics: output is float32.
    return partials.sum(axis=0) * jnp.float32(1.0 / R)


def hipool_fixed_reference(y_frame, seq_len, n_classes, R):
    """Pure-JAX reference matching the PyTorch module (f32 math)."""
    B = y_frame.shape[0]
    bin_len = seq_len // R
    y32 = y_frame.astype(jnp.float32)
    binned = y32.reshape(B, R, bin_len, n_classes)
    return jnp.max(binned, axis=2).mean(axis=1)


if __name__ == "__main__":
    key = jax.random.PRNGKey(0)
    k1, k2, k3 = jax.random.split(key, 3)

    # 1) Lane-dense (fold=16), small budget -> multi-step reduction split into
    #    2 parallel partial sums: grid = (1, 2, 2).
    B1, R1, BIN1, C1 = 4, 16, 16, 8          # seq_len = 256
    SEQ1 = R1 * BIN1
    y1 = jax.random.normal(k1, (B1, SEQ1, C1), dtype=jnp.float32)
    out1 = jax.block_until_ready(
        hipool_fixed_forward(y1, SEQ1, C1, R1, block_budget_bytes=64 * 1024))
    ref1 = hipool_fixed_reference(y1, SEQ1, C1, R1)
    assert out1.shape == (B1, C1)
    assert jnp.allclose(out1, ref1, atol=1e-5, rtol=1e-5), "lane-dense mismatch"

    # 2) Fallback layout (fold=1: bin_len=12 not divisible by 128/C),
    #    multi-step reduction: grid = (1, 2, 2).
    B2, R2, BIN2, C2 = 2, 4, 12, 8           # seq_len = 48
    SEQ2 = R2 * BIN2
    y2 = jax.random.normal(k2, (B2, SEQ2, C2), dtype=jnp.float32)
    out2 = jax.block_until_ready(
        hipool_fixed_forward(y2, SEQ2, C2, R2, block_budget_bytes=16 * 1024))
    ref2 = hipool_fixed_reference(y2, SEQ2, C2, R2)
    assert out2.shape == (B2, C2)
    assert jnp.allclose(out2, ref2, atol=1e-5, rtol=1e-5), "fallback mismatch"

    # 3) bf16 input, default (8 MiB) budget: bf16 max kept packed, f32 accum.
    y3 = y1.astype(jnp.bfloat16)
    out3 = jax.block_until_ready(hipool_fixed_forward(y3, SEQ1, C1, R1))
    ref3 = hipool_fixed_reference(y3, SEQ1, C1, R1)
    assert jnp.allclose(out3, ref3, atol=1e-2, rtol=1e-2), "bf16 mismatch"

    # 4) Batch large enough to tile: b_tile=8 -> 2 parallel batch blocks.
    B4, R4, BIN4, C4 = 16, 4, 32, 8          # seq_len = 128
    SEQ4 = R4 * BIN4
    y4 = jax.random.normal(k3, (B4, SEQ4, C4), dtype=jnp.float32)
    out4 = jax.block_until_ready(hipool_fixed_forward(y4, SEQ4, C4, R4))
    ref4 = hipool_fixed_reference(y4, SEQ4, C4, R4)
    assert out4.shape == (B4, C4)
    assert jnp.allclose(out4, ref4, atol=1e-5, rtol=1e-5), "batch-tile mismatch"

    print("KERNEL_OK")
</pallas_src>

<mosaic_0001>
module attributes {stable_mosaic.version = 11 : i64} {
  func.func @_hipool_kernel(%arg0: i32, %arg1: i32, %arg2: i32, %arg3: memref<4x4x1x128xf32, #tpu.memory_space<vmem>>, %arg4: memref<1x4x8xf32, #tpu.memory_space<vmem>>, %arg5: memref<4x8xf32, #tpu.memory_space<vmem>>) attributes {dimension_semantics = [#tpu.dimension_semantics<parallel>, #tpu.dimension_semantics<parallel>, #tpu.dimension_semantics<arbitrary>], iteration_bounds = array<i64: 1, 2, 2>, scalar_prefetch = 0 : i64, scratch_operands = 1 : i64, tpu.core_type = #tpu.core_type<tc>, window_params = [{transform_indices = @transform_0, window_bounds = array<i64: 4, 4, 1, 128>}, {transform_indices = @transform_1, window_bounds = array<i64: 1, 4, 8>}]} {
    %c0_i32 = arith.constant 0 : i32
    %0 = arith.cmpi eq, %arg2, %c0_i32 : i32
    %1 = arith.extui %0 : i1 to i32
    %c0_i32_0 = arith.constant 0 : i32
    %2 = arith.cmpi ne, %1, %c0_i32_0 : i32
    scf.if %2 {
      %cst_10 = arith.constant 0.000000e+00 : f32
      %24 = vector.broadcast %cst_10 : f32 to vector<4x8xf32>
      %c0_11 = arith.constant 0 : index
      %c0_12 = arith.constant 0 : index
      %25 = vector.load %arg5[%c0_11, %c0_12] : memref<4x8xf32, #tpu.memory_space<vmem>>, vector<4x8xf32>
      tpu.vector_store %arg5[%c0_11, %c0_12], %24 {strides = array<i32>} : memref<4x8xf32, #tpu.memory_space<vmem>>, vector<4x8xf32>,
    } else {
    }
    %c0 = arith.constant 0 : index
    %c0_1 = arith.constant 0 : index
    %c0_2 = arith.constant 0 : index
    %c0_3 = arith.constant 0 : index
    %3 = vector.load %arg3[%c0, %c0_1, %c0_2, %c0_3] : memref<4x4x1x128xf32, #tpu.memory_space<vmem>>, vector<4x4x1x128xf32>
    %cst = arith.constant dense<0xFF800000> : vector<4x4x128xf32>
    %4 = vector.multi_reduction <maximumf>, %3, %cst [2] : vector<4x4x1x128xf32> to vector<4x4x128xf32>
    %5 = vector.extract_strided_slice %4 {offsets = [0, 0, 0], sizes = [4, 4, 64], strides = [1, 1, 1]} : vector<4x4x128xf32> to vector<4x4x64xf32>
    %6 = vector.extract_strided_slice %4 {offsets = [0, 0, 64], sizes = [4, 4, 64], strides = [1, 1, 1]} : vector<4x4x128xf32> to vector<4x4x64xf32>
    %7 = arith.maximumf %5, %6 : vector<4x4x64xf32>
    %8 = vector.extract_strided_slice %7 {offsets = [0, 0, 0], sizes = [4, 4, 32], strides = [1, 1, 1]} : vector<4x4x64xf32> to vector<4x4x32xf32>
    %9 = vector.extract_strided_slice %7 {offsets = [0, 0, 32], sizes = [4, 4, 32], strides = [1, 1, 1]} : vector<4x4x64xf32> to vector<4x4x32xf32>
    %10 = arith.maximumf %8, %9 : vector<4x4x32xf32>
    %11 = vector.extract_strided_slice %10 {offsets = [0, 0, 0], sizes = [4, 4, 16], strides = [1, 1, 1]} : vector<4x4x32xf32> to vector<4x4x16xf32>
    %12 = vector.extract_strided_slice %10 {offsets = [0, 0, 16], sizes = [4, 4, 16], strides = [1, 1, 1]} : vector<4x4x32xf32> to vector<4x4x16xf32>
    %13 = arith.maximumf %11, %12 : vector<4x4x16xf32>
    %14 = vector.extract_strided_slice %13 {offsets = [0, 0, 0], sizes = [4, 4, 8], strides = [1, 1, 1]} : vector<4x4x16xf32> to vector<4x4x8xf32>
    %15 = vector.extract_strided_slice %13 {offsets = [0, 0, 8], sizes = [4, 4, 8], strides = [1, 1, 1]} : vector<4x4x16xf32> to vector<4x4x8xf32>
    %16 = arith.maximumf %14, %15 : vector<4x4x8xf32>
    %c0_4 = arith.constant 0 : index
    %c0_5 = arith.constant 0 : index
    %17 = vector.load %arg5[%c0_4, %c0_5] : memref<4x8xf32, #tpu.memory_space<vmem>>, vector<4x8xf32>
    %cst_6 = arith.constant dense<0.000000e+00> : vector<4x8xf32>
    %18 = vector.multi_reduction <add>, %16, %cst_6 [1] : vector<4x4x8xf32> to vector<4x8xf32>
    %19 = arith.addf %17, %18 : vector<4x8xf32>
    %c0_7 = arith.constant 0 : index
    %c0_8 = arith.constant 0 : index
    %20 = vector.load %arg5[%c0_7, %c0_8] : memref<4x8xf32, #tpu.memory_space<vmem>>, vector<4x8xf32>
    tpu.vector_store %arg5[%c0_7, %c0_8], %19 {strides = array<i32>} : memref<4x8xf32, #tpu.memory_space<vmem>>, vector<4x8xf32>,
    %c1_i32 = arith.constant 1 : i32
    %21 = arith.cmpi eq, %arg2, %c1_i32 : i32
    %22 = arith.extui %21 : i1 to i32
    %c0_i32_9 = arith.constant 0 : i32
    %23 = arith.cmpi ne, %22, %c0_i32_9 : i32
    scf.if %23 {
      %c0_10 = arith.constant 0 : index
      %c0_11 = arith.constant 0 : index
      %24 = vector.load %arg5[%c0_10, %c0_11] : memref<4x8xf32, #tpu.memory_space<vmem>>, vector<4x8xf32>
      %c0_12 = arith.constant 0 : index
      %c0_13 = arith.constant 0 : index
      %c0_14 = arith.constant 0 : index
      %25 = vector.load %arg4[%c0_12, %c0_13, %c0_14] : memref<1x4x8xf32, #tpu.memory_space<vmem>>, vector<1x4x8xf32>
      %26 = vector.shape_cast %25 : vector<1x4x8xf32> to vector<4x8xf32>
      %27 = vector.shape_cast %24 : vector<4x8xf32> to vector<1x4x8xf32>
      tpu.vector_store %arg4[%c0_12, %c0_13, %c0_14], %27 {strides = array<i32>} : memref<1x4x8xf32, #tpu.memory_space<vmem>>, vector<1x4x8xf32>,
    } else {
    }
    return
  }
  func.func @transform_0(%arg0: i32, %arg1: i32, %arg2: i32) -> (i32, i32, i32, i32) {
    %c2_i32 = arith.constant 2 : i32
    %0 = arith.muli %arg1, %c2_i32 : i32
    %1 = arith.addi %0, %arg2 : i32
    %c0_i32 = arith.constant 0 : i32
    %c0_i32_0 = arith.constant 0 : i32
    %c0_i32_1 = arith.constant 0 : i32
    return %arg0, %1, %c0_i32, %c0_i32_0 : i32, i32, i32, i32
  }
  func.func @transform_1(%arg0: i32, %arg1: i32, %arg2: i32) -> (i32, i32, i32) {
    %c0_i32 = arith.constant 0 : i32
    %c0_i32_0 = arith.constant 0 : i32
    return %arg1, %arg0, %c0_i32 : i32, i32, i32
  }
}

</mosaic_0001>

<bundles_post_ra>
// kernel: tpu_custom_call.1
= control target key start
LH: loop header
LB: loop body
LE: loop exit
PB: predicated region body
PF: predicated region fallthrough
CT: control target
= control target key end

     0   :  { %6 = vsyncpa [#allocation4], 0  ;;  %s1426_s0 = inlined_call_operand.hbm [shape: f32[4,16,1,128], index: 0, kind: input, shape index: {}]   ;;  %s1427_s1 = inlined_call_operand.hbm [shape: f32[2,4,8], index: 1, kind: output, shape index: {}]  }
   0x1   :  { %8 = vsyncpa [#allocation4 + $0x1], 0 }
   0x2   :  { %9 = vsyncpa [#allocation5], 0 }
   0x3   :  { %11 = vsyncpa [#allocation5 + $0x1], 0  ;;  %s1096_s6 = smov 0   ;;  %s1098_s7 = smov 0  }
   0x4   :  { %s1100_s8 = smov 0   ;;  %s1102_s9 = smov 0  }
   0x5   :  { %s1104_s10 = smov 0   ;;  %s1106_s11 = smov 0  }
   0x6   :  { %s1108_s12 = smov 0   ;;  %s1110_s13 = smov 0  }
   0x7   :  { %s1112_s14 = smov 0   ;;  %s1114_s15 = smov 0  }
   0x8   :  { %s1116_s16 = smov 0  }
   0x9 LB: > { %1431 = sst [smem:[#allocation12_spill]] %s1067_s15  ;;  %s811_s17 = sadd.s32 4294967295, %s1071_s16   ;;  %s1071_s16 = sphi %s1116_s16, %s17_s16   ;;  %s1067_s15 = sphi %s1114_s15, %s1440_s15   ;;  %s1063_s14 = sphi %s1112_s14, %s1448_s14   ;;  %s1059_s13 = sphi %s1110_s13, %s1438_s13   ;;  %s1055_s12 = sphi %s1108_s12, %s1447_s12   ;;  %s1051_s11 = sphi %s1106_s11, %s1446_s11   ;;  %s1047_s10 = sphi %s1104_s10, %s1445_s10   ;;  %s1043_s9 = sphi %s1102_s9, %s1444_s9   ;;  %s1039_s8 = sphi %s1100_s8, %s1443_s8   ;;  %s1035_s7 = sphi %s1098_s7, %s1442_s7   ;;  %s1031_s6 = sphi %s1096_s6, %s1441_s6  }
   0xa   : > { %s812_s18 = sadd.s32 4294967294, %s1071_s16   ;;  %s29_s19 = sadd.s32 1, %s1063_s14 }
   0xb   : > { %s32_s20 = sadd.s32 1, %s1067_s15  ;;  %p30_p0 = scmp.ge.s32.totalorder %s29_s19, 2 }
   0xc   : > { %s813_s21 = sshll.u32 %s1067_s15, 1  ;;  %s49_s23 = sadd.s32 1, %s1051_s11 }
   0xd   : > { %s1155_s22 = sadd.s32 %s1063_s14, %s813_s21  ;;  %s1450_s19 = smov (%p30_p0, %s29_s19), 0 }
   0xe   : > { %1432 = sst [smem:[#allocation13_spill]] %s1450_s19  ;;  %s1452_s20 = smov (!%p30_p0, %s32_s20), %s1067_s15 }
   0xf   : > { %p56_p1 = scmp.ne.s32.totalorder %s1051_s11, %s1047_s10  ;;  %p57_p2 = scmp.eq.s32.totalorder %s1071_s16, 0 }
  0x10   : > { %p34_p3 = scmp.ge.s32.totalorder %s1452_s20, 2  ;;  %p62_p4 = scmp.ne.s32.totalorder %s1047_s10, %s1043_s9 }
  0x11   : > { %p1165_p5 = por %p57_p2, %p56_p1  ;;  %p63_p6 = scmp.eq.s32.totalorder %s811_s17, 0 }
  0x12   : > { %s1454_s20 = smov (%p34_p3, %s1452_s20), 0  ;;  %s77_s26 = sadd.s32 1, %s1039_s8 }
  0x13   : > { %1434 = sst [smem:[#allocation14_spill]] %s1454_s20  ;;  %p1171_p7 = por %p63_p6, %p62_p4 }
  0x14   : > { %s814_s27 = sshll.u32 %s1454_s20, 1  ;;  %s72_s28 = ssub.s32 %s1067_s15, %s1454_s20 }
  0x15   : > { %s43_s29 = sadd.s32 %s814_s27, %s1450_s19  ;;  %p75_p8 = scmp.eq.s32.totalorder %s72_s28, 0 }
  0x16   : > { %s45_s30 = ssub.s32 %s1155_s22, %s43_s29  ;;  %p87_p9 = scmp.ne.s32.totalorder %s1039_s8, %s1035_s7 }
  0x17   : > { %p47_p10 = scmp.eq.s32.totalorder %s45_s30, 0  ;;  %p88_p11 = scmp.eq.s32.totalorder %s811_s17, 3 }
  0x18   : > { %s1184_s2 = scalar_select %p75_p8, %s1039_s8, %s77_s26  }
  0x19   : > { %s1187_s3 = scalar_select %p47_p10, %s1051_s11, %s49_s23  }
  0x1a   : > { %p1189_p12 = por %p88_p11, %p87_p9  ;;  %p93_p13 = scmp.ne.s32.totalorder %s1035_s7, %s1031_s6 }
  0x1b   : > { %p94_p0 = scmp.eq.s32.totalorder %s812_s18, 3  ;;  %p816_p2 = scmp.ge.s32.totalorder %s1071_s16, 4 }
  0x1d   : > { %p1197_p1 = por %p94_p0, %p93_p13  ;;  %110 = sbr.rel (%p816_p2) target bundleno = 49 (0x31), region = 16 }
  0x24   : > { %s114_s9 = sand.u32 1, %s1051_s11   ;;  %s832_s17 = sshll.u32 %s1155_s22, 6 }
  0x25   : > { %s817_s21 = sshll.u32 %s114_s9, 4  ;;  %s129_s26 = scalar_lea.hbm %s1426_s0, %s832_s17 }
  0x26   : > { %s833_s27 = scalar_select %p1165_p5, [#allocation0], [#allocation9] }
  0x27   : > { %s118_s28 = scalar_lea.vmem [#allocation3], %s817_s21  ;;  %s1073_s20 = smov 256  }
  0x28   : > { %s142_s29 = sshll.u32 %s118_s28, 4  ;;  %s134_s30 = sld [smem:[%s833_s27]]   ;;  %s143_s29 = int_to_ptr.vmem [resolvable:$true] %s142_s29 }
  0x29   : > { %834 = sst [smem:[#allocation8]] (%p1165_p5), %s1073_s20  ;;  %s1074_s19 = smov 64  }
  0x2a   : > { %835 = sst [smem:[#allocation8 + $0x1]] (%p1165_p5), %s1074_s19  ;;  %s1075_s22 = smov 4  }
  0x2b   : > { %836 = sst [smem:[#allocation8 + $0x2]] (%p1165_p5), %s1075_s22  ;;  %s1076_s15 = smov 16  }
  0x2c   : > { %837 = sst [smem:[#allocation8 + $0x3]] (%p1165_p5), %s1076_s15  ;;  %s1077_s21 = smov 1  }
  0x2d   : > { %838 = sst [smem:[#allocation8 + $0x4]] (%p1165_p5), %s1076_s15  ;;  %s115_s18 = scalar_lea.sflag [#allocation4], %s114_s9 }
  0x2e   : > { %s821_s17 = sshll.u32 %s134_s30, 26  ;;  %839 = sst [smem:[#allocation8 + $0x5]] (%p1165_p5), %s1077_s21 }
  0x2f   : > { %s822_s23 = sadd.s32 134217728, %s821_s17  ;;  %s1078_s27 = smov [#allocation7]  }
  0x30   : > { %840 = dma.general (%p1165_p5), %s129_s26, 256, %s143_s29, %s115_s18, %s1078_s27, [#allocation8], %s822_s23, 0  }
  0x31 PF: > { %p823_p3 = scmp.ge.s32.totalorder %s1071_s16, 1  ;;  %p163_p4 = scmp.lt.s32.totalorder %s1071_s16, 5 }
  0x33   : > { %p164_p6 = pnand %p823_p3, %p163_p4 }
  0x34   : > { %s169_s19 = sand.u32 (!%p164_p6), 1, %s1047_s10  }
  0x35   : > { %167 = sbr.rel (%p164_p6) target bundleno = 630 (0x276), region = 24  ;;  %s824_s15 = sshll.u32 (!%p164_p6), %s169_s19, 4 }
  0x36   : > { %s170_s20 = scalar_lea.sflag (!%p164_p6), [#allocation4], %s169_s19  ;;  %s1226_s28 = scalar_lea.vmem (!%p164_p6), [#allocation3], %s824_s15 }
  0x3c   : > { %1022 = dma.done.wait (%p1171_p7), %s170_s20, 256  }
  0x3d   : > { %1024 = vsyncadd (%p1171_p7), %s170_s20, 4294967040  ;;  %s189_s24 = sand.u32 1, %s1035_s7   ;;  %p826_p5 = scmp.ne.s32.totalorder %s1055_s12, 0 }
  0x3e   : > { %s1235_s9 = sshll.u32 %s189_s24, 2  ;;  %vm200_vm0 = vcmask (!%p826_p5), 60416   ;;  %v1079_v0 = vmov (!%p826_p5), 0.0  }
  0x3f   : > { %s191_s26 = scalar_lea.vmem [#allocation6], %s1235_s9  ;;  %199 = sbr.rel (%p826_p5) target bundleno = 70 (0x46), region = 32  ;;  %201 = vst.msk [vmem:[#allocation2] sm:$0xf] (!%p826_p5), %vm200_vm0, %v1079_v0 }
  0x46 PF: > { %v206_v1 = vld [vmem:[%s1226_s28 + $0x4] sm:$0x1]  ;;  %v208_v2 = vld [vmem:[%s1226_s28 + $0x6] sm:$0x1]  ;;  %s1080_s25 = smov 64   ;;  %s1081_s29 = smov 96  }
  0x47   : > { %242 = vrot.lane.b32.xlu0 %v206_v1, %s1080_s25  ;;  %246 = vrot.lane.b32.xlu1 %v208_v2, %s1080_s25  ;;  %v207_v3 = vld [vmem:[%s1226_s28 + $0x5] sm:$0x1]  ;;  %v209_v4 = vld [vmem:[%s1226_s28 + $0x7] sm:$0x1]  ;;  %s1082_s30 = smov 112   ;;  %s1083_s22 = smov 120  }
  0x48   : > { %v210_v5 = vld [vmem:[%s1226_s28 + $0x8] sm:$0x1]  ;;  %v211_v6 = vld [vmem:[%s1226_s28 + $0x9] sm:$0x1]  ;;  %v212_v7 = vld [vmem:[%s1226_s28 + $0xa] sm:$0x1] }
  0x49   : > { %v213_v8 = vld [vmem:[%s1226_s28 + $0xb] sm:$0x1]  ;;  %v202_v9 = vld [vmem:[%s1226_s28] sm:$0x1]  ;;  %v203_v10 = vld [vmem:[%s1226_s28 + $0x1] sm:$0x1] }
  0x4a   : > { %v204_v11 = vld [vmem:[%s1226_s28 + $0x2] sm:$0x1]  ;;  %v205_v12 = vld [vmem:[%s1226_s28 + $0x3] sm:$0x1]  ;;  %v214_v13 = vld [vmem:[%s1226_s28 + $0xc] sm:$0x1] }
  0x4b   : > { %244 = vrot.lane.b32.xlu0 %v207_v3, %s1080_s25  ;;  %248 = vrot.lane.b32.xlu1 %v209_v4, %s1080_s25  ;;  %v215_v14 = vld [vmem:[%s1226_s28 + $0xd] sm:$0x1]  ;;  %v216_v15 = vld [vmem:[%s1226_s28 + $0xe] sm:$0x1]  ;;  %vm655_vm1 = vcmask 60416   ;;  %vm689_vm2 = vcmask 1041409  }
  0x4c   : > { %v217_v16 = vld [vmem:[%s1226_s28 + $0xf] sm:$0x1]  ;;  %vm692_vm3 = vcmask 1042434   ;;  %vm695_vm4 = vcmask 1043459   ;;  %p827_p7 = scmp.ne.s32.totalorder %s1055_s12, 1 }
  0x4f   : > { %250 = vrot.lane.b32.xlu0 %v210_v5, %s1080_s25  ;;  %252 = vrot.lane.b32.xlu1 %v211_v6, %s1080_s25 }
  0x53   : > { %254 = vrot.lane.b32.xlu0 %v212_v7, %s1080_s25  ;;  %256 = vrot.lane.b32.xlu1 %v213_v8, %s1080_s25 }
  0x57   : > { %234 = vrot.lane.b32.xlu0 %v202_v9, %s1080_s25  ;;  %236 = vrot.lane.b32.xlu1 %v203_v10, %s1080_s25 }
  0x5b   : > { %238 = vrot.lane.b32.xlu0 %v204_v11, %s1080_s25  ;;  %240 = vrot.lane.b32.xlu1 %v205_v12, %s1080_s25 }
  0x5f   : > { %258 = vrot.lane.b32.xlu0 %v214_v13, %s1080_s25  ;;  %260 = vrot.lane.b32.xlu1 %v215_v14, %s1080_s25 }
  0x63   : > { %262 = vrot.lane.b32.xlu0 %v216_v15, %s1080_s25  ;;  %264 = vrot.lane.b32.xlu1 %v217_v16, %s1080_s25 }
  0xb9   : > { %v243_v17 = vpop.permute.xlu0 %242  ;;  %v247_v18 = vpop.permute.xlu1 %246 }
  0xba   : > { %v286_v19 = vmax.f32 %v206_v1, %v243_v17  ;;  %v288_v20 = vmax.f32 %v208_v2, %v247_v18 }
  0xbc   : > { %322 = vrot.lane.b32.xlu0 %v286_v19, %s1081_s29 }
  0xbd   : > { %v245_v21 = vpop.permute.xlu0 %244  ;;  %v249_v22 = vpop.permute.xlu1 %248 }
  0xbe   : > { %v287_v23 = vmax.f32 %v207_v3, %v245_v21  ;;  %v289_v24 = vmax.f32 %v209_v4, %v249_v22 }
  0xc0   : > { %324 = vrot.lane.b32.xlu1 %v287_v23, %s1081_s29  ;;  %326 = vrot.lane.b32.xlu0 %v288_v20, %s1081_s29 }
  0xc1   : > { %v251_v25 = vpop.permute.xlu0 %250  ;;  %v253_v26 = vpop.permute.xlu1 %252 }
  0xc2   : > { %v290_v27 = vmax.f32 %v210_v5, %v251_v25  ;;  %v291_v28 = vmax.f32 %v211_v6, %v253_v26 }
  0xc4   : > { %328 = vrot.lane.b32.xlu1 %v289_v24, %s1081_s29  ;;  %330 = vrot.lane.b32.xlu0 %v290_v27, %s1081_s29 }
  0xc5   : > { %v255_v29 = vpop.permute.xlu0 %254  ;;  %v257_v30 = vpop.permute.xlu1 %256 }
  0xc6   : > { %v292_v31 = vmax.f32 %v212_v7, %v255_v29  ;;  %v293_v32 = vmax.f32 %v213_v8, %v257_v30 }
  0xc8   : > { %332 = vrot.lane.b32.xlu1 %v291_v28, %s1081_s29  ;;  %334 = vrot.lane.b32.xlu0 %v292_v31, %s1081_s29 }
  0xc9   : > { %v235_v33 = vpop.permute.xlu0 %234  ;;  %v237_v34 = vpop.permute.xlu1 %236 }
  0xca   : > { %v282_v35 = vmax.f32 %v202_v9, %v235_v33  ;;  %v283_v36 = vmax.f32 %v203_v10, %v237_v34 }
  0xcc   : > { %336 = vrot.lane.b32.xlu1 %v293_v32, %s1081_s29  ;;  %314 = vrot.lane.b32.xlu0 %v282_v35, %s1081_s29 }
  0xcd   : > { %v239_v37 = vpop.permute.xlu0 %238  ;;  %v241_v38 = vpop.permute.xlu1 %240 }
  0xce   : > { %v284_v39 = vmax.f32 %v204_v11, %v239_v37  ;;  %v285_v40 = vmax.f32 %v205_v12, %v241_v38 }
  0xd0   : > { %316 = vrot.lane.b32.xlu1 %v283_v36, %s1081_s29  ;;  %318 = vrot.lane.b32.xlu0 %v284_v39, %s1081_s29 }
  0xd1   : > { %v259_v41 = vpop.permute.xlu0 %258  ;;  %v261_v42 = vpop.permute.xlu1 %260 }
  0xd2   : > { %v294_v43 = vmax.f32 %v214_v13, %v259_v41  ;;  %v295_v44 = vmax.f32 %v215_v14, %v261_v42 }
  0xd4   : > { %320 = vrot.lane.b32.xlu1 %v285_v40, %s1081_s29  ;;  %338 = vrot.lane.b32.xlu0 %v294_v43, %s1081_s29 }
  0xd5   : > { %v263_v45 = vpop.permute.xlu0 %262  ;;  %v265_v46 = vpop.permute.xlu1 %264 }
  0xd6   : > { %v296_v47 = vmax.f32 %v216_v15, %v263_v45  ;;  %v297_v48 = vmax.f32 %v217_v16, %v265_v46 }
  0xd8   : > { %340 = vrot.lane.b32.xlu1 %v295_v44, %s1081_s29  ;;  %342 = vrot.lane.b32.xlu0 %v296_v47, %s1081_s29 }
  0xdc   : > { %344 = vrot.lane.b32.xlu1 %v297_v48, %s1081_s29 }
 0x12e   : > { %v323_v49 = vpop.permute.xlu0 %322 }
 0x12f   : > { %v366_v50 = vmax.f32 %v286_v19, %v323_v49 }
 0x131   : > { %402 = vrot.lane.b32.xlu0 %v366_v50, %s1082_s30 }
 0x132   : > { %v325_v51 = vpop.permute.xlu1 %324  ;;  %v327_v52 = vpop.permute.xlu0 %326 }
 0x133   : > { %v367_v53 = vmax.f32 %v287_v23, %v325_v51  ;;  %v368_v54 = vmax.f32 %v288_v20, %v327_v52  ;;  %v560_v52 = vlaneseq }
 0x135   : > { %404 = vrot.lane.b32.xlu1 %v367_v53, %s1082_s30  ;;  %406 = vrot.lane.b32.xlu0 %v368_v54, %s1082_s30 }
 0x136   : > { %v329_v55 = vpop.permute.xlu1 %328  ;;  %v331_v56 = vpop.permute.xlu0 %330 }
 0x137   : > { %v369_v57 = vmax.f32 %v289_v24, %v329_v55  ;;  %v370_v58 = vmax.f32 %v290_v27, %v331_v56  ;;  %v561_v56 = vshrl.u32 %v560_v52, 7 }
 0x139   : > { %408 = vrot.lane.b32.xlu1 %v369_v57, %s1082_s30  ;;  %410 = vrot.lane.b32.xlu0 %v370_v58, %s1082_s30 }
 0x13a   : > { %v333_v59 = vpop.permute.xlu1 %332  ;;  %v335_v60 = vpop.permute.xlu0 %334 }
 0x13b   : > { %v371_v61 = vmax.f32 %v291_v28, %v333_v59  ;;  %v372_v62 = vmax.f32 %v292_v31, %v335_v60 }
 0x13d   : > { %412 = vrot.lane.b32.xlu1 %v371_v61, %s1082_s30  ;;  %414 = vrot.lane.b32.xlu0 %v372_v62, %s1082_s30 }
 0x13e   : > { %v337_v63 = vpop.permute.xlu1 %336  ;;  %v315_v0 = vpop.permute.xlu0 %314 }
 0x13f   : > { %v373_v1 = vmax.f32 %v293_v32, %v337_v63  ;;  %v362_v2 = vmax.f32 %v282_v35, %v315_v0 }
 0x141   : > { %416 = vrot.lane.b32.xlu1 %v373_v1, %s1082_s30  ;;  %394 = vrot.lane.b32.xlu0 %v362_v2, %s1082_s30 }
 0x142   : > { %v317_v3 = vpop.permute.xlu1 %316  ;;  %v319_v4 = vpop.permute.xlu0 %318 }
 0x143   : > { %v363_v5 = vmax.f32 %v283_v36, %v317_v3  ;;  %v364_v6 = vmax.f32 %v284_v39, %v319_v4 }
 0x145   : > { %396 = vrot.lane.b32.xlu1 %v363_v5, %s1082_s30  ;;  %398 = vrot.lane.b32.xlu0 %v364_v6, %s1082_s30 }
 0x146   : > { %v321_v7 = vpop.permute.xlu1 %320  ;;  %v339_v8 = vpop.permute.xlu0 %338 }
 0x147   : > { %v365_v9 = vmax.f32 %v285_v40, %v321_v7  ;;  %v374_v10 = vmax.f32 %v294_v43, %v339_v8 }
 0x149   : > { %400 = vrot.lane.b32.xlu1 %v365_v9, %s1082_s30  ;;  %418 = vrot.lane.b32.xlu0 %v374_v10, %s1082_s30 }
 0x14a   : > { %v341_v11 = vpop.permute.xlu1 %340  ;;  %v343_v12 = vpop.permute.xlu0 %342 }
 0x14b   : > { %v375_v13 = vmax.f32 %v295_v44, %v341_v11  ;;  %v376_v14 = vmax.f32 %v296_v47, %v343_v12 }
 0x14d   : > { %420 = vrot.lane.b32.xlu1 %v375_v13, %s1082_s30  ;;  %422 = vrot.lane.b32.xlu0 %v376_v14, %s1082_s30 }
 0x14e   : > { %v345_v15 = vpop.permute.xlu1 %344 }
 0x14f   : > { %v377_v16 = vmax.f32 %v297_v48, %v345_v15 }
 0x151   : > { %424 = vrot.lane.b32.xlu1 %v377_v16, %s1082_s30 }
 0x1a3   : > { %v403_v17 = vpop.permute.xlu0 %402 }
 0x1a4   : > { %v1287_v18 = vmax.f32 %v366_v50, %v403_v17  ;;  %v1084_v50 = vmov 1966171168  }
 0x1a5   : > { %v558_v51 = vunpack.c.l.s4 %v1084_v50 }
 0x1a6   : > { %482 = vrot.lane.b32.xlu0 %v1287_v18, %s1083_s22 }
 0x1a7   : > { %v405_v19 = vpop.permute.xlu1 %404  ;;  %v407_v20 = vpop.permute.xlu0 %406  ;;  %v559_v55 = vunpack.c.0.s8 %v558_v51 }
 0x1a8   : > { %v447_v21 = vmax.f32 %v367_v53, %v405_v19  ;;  %v448_v22 = vmax.f32 %v368_v54, %v407_v20 }
 0x1a9   : > { %v1331_v63 = vsub.s32 %v559_v55, %v561_v56 }
 0x1aa   : > { %484 = vrot.lane.b32.xlu1 %v447_v21, %s1083_s22  ;;  %486 = vrot.lane.b32.xlu0 %v448_v22, %s1083_s22 }
 0x1ab   : > { %v409_v23 = vpop.permute.xlu1 %408  ;;  %v411_v24 = vpop.permute.xlu0 %410 }
 0x1ac   : > { %v449_v25 = vmax.f32 %v369_v57, %v409_v23  ;;  %v1293_v26 = vmax.f32 %v370_v58, %v411_v24 }
 0x1ae   : > { %488 = vrot.lane.b32.xlu1 %v449_v25, %s1083_s22  ;;  %490 = vrot.lane.b32.xlu0 %v1293_v26, %s1083_s22 }
 0x1af   : > { %v413_v27 = vpop.permute.xlu1 %412  ;;  %v415_v28 = vpop.permute.xlu0 %414 }
 0x1b0   : > { %v451_v29 = vmax.f32 %v371_v61, %v413_v27  ;;  %v452_v30 = vmax.f32 %v372_v62, %v415_v28 }
 0x1b2   : > { %492 = vrot.lane.b32.xlu1 %v451_v29, %s1083_s22  ;;  %494 = vrot.lane.b32.xlu0 %v452_v30, %s1083_s22 }
 0x1b3   : > { %v417_v31 = vpop.permute.xlu1 %416  ;;  %v395_v32 = vpop.permute.xlu0 %394 }
 0x1b4   : > { %v453_v33 = vmax.f32 %v373_v1, %v417_v31  ;;  %v1300_v34 = vmax.f32 %v362_v2, %v395_v32 }
 0x1b6   : > { %496 = vrot.lane.b32.xlu1 %v453_v33, %s1083_s22  ;;  %474 = vrot.lane.b32.xlu0 %v1300_v34, %s1083_s22 }
 0x1b7   : > { %v397_v35 = vpop.permute.xlu1 %396  ;;  %v399_v36 = vpop.permute.xlu0 %398 }
 0x1b8   : > { %v1305_v37 = vmax.f32 %v363_v5, %v397_v35  ;;  %v1307_v38 = vmax.f32 %v364_v6, %v399_v36 }
 0x1ba   : > { %476 = vrot.lane.b32.xlu1 %v1305_v37, %s1083_s22  ;;  %478 = vrot.lane.b32.xlu0 %v1307_v38, %s1083_s22 }
 0x1bb   : > { %v401_v39 = vpop.permute.xlu1 %400  ;;  %v419_v40 = vpop.permute.xlu0 %418 }
 0x1bc   : > { %v445_v41 = vmax.f32 %v365_v9, %v401_v39  ;;  %v1313_v42 = vmax.f32 %v374_v10, %v419_v40 }
 0x1be   : > { %480 = vrot.lane.b32.xlu1 %v445_v41, %s1083_s22  ;;  %498 = vrot.lane.b32.xlu0 %v1313_v42, %s1083_s22 }
 0x1bf   : > { %v421_v43 = vpop.permute.xlu1 %420  ;;  %v423_v44 = vpop.permute.xlu0 %422 }
 0x1c0   : > { %v1318_v45 = vmax.f32 %v375_v13, %v421_v43  ;;  %v1320_v46 = vmax.f32 %v376_v14, %v423_v44 }
 0x1c2   : > { %500 = vrot.lane.b32.xlu1 %v1318_v45, %s1083_s22  ;;  %502 = vrot.lane.b32.xlu0 %v1320_v46, %s1083_s22 }
 0x1c3   : > { %v425_v47 = vpop.permute.xlu1 %424 }
 0x1c4   : > { %v1326_v48 = vmax.f32 %v377_v16, %v425_v47 }
 0x1c6   : > { %504 = vrot.lane.b32.xlu1 %v1326_v48, %s1083_s22 }
 0x218   : > { %v483_v49 = vpop.permute.xlu0 %482 }
 0x219   : > { %v526_v58 = vmax.f32 %v1287_v18, %v483_v49 }
 0x21c   : > { %v485_v53 = vpop.permute.xlu1 %484  ;;  %v487_v54 = vpop.permute.xlu0 %486 }
 0x21d   : > { %v527_v57 = vmax.f32 %v447_v21, %v485_v53  ;;  %v528_v61 = vmax.f32 %v448_v22, %v487_v54 }
 0x21f   : > { %v579_v0 = vcombine.low %v526_v58, %v527_v57 }
 0x220   : > { %v489_v59 = vpop.permute.xlu1 %488  ;;  %v491_v60 = vpop.permute.xlu0 %490 }
 0x221   : > { %v529_v62 = vmax.f32 %v449_v25, %v489_v59  ;;  %v587_v6 = vrot.slane %v579_v0, %v1331_v63  ;;  %v530_v7 = vmax.f32 %v1293_v26, %v491_v60 }
 0x223   : > { %v580_v1 = vcombine.low %v528_v61, %v529_v62 }
 0x224   : > { %v493_v2 = vpop.permute.xlu1 %492  ;;  %v495_v3 = vpop.permute.xlu0 %494 }
 0x225   : > { %v594_v4 = vrot.slane %v580_v1, %v1331_v63  ;;  %v531_v5 = vmax.f32 %v451_v29, %v493_v2  ;;  %v532_v12 = vmax.f32 %v452_v30, %v495_v3 }
 0x227   : > { %v595_v8 = vcombine.low %v587_v6, %v594_v4  ;;  %v603_v11 = vcombine.low %v530_v7, %v531_v5 }
 0x228   : > { %v497_v9 = vpop.permute.xlu1 %496  ;;  %v475_v10 = vpop.permute.xlu0 %474 }
 0x229   : > { %v533_v13 = vmax.f32 %v453_v33, %v497_v9  ;;  %v602_v15 = vrot.slane %v595_v8, %v1331_v63  ;;  %v611_v18 = vrot.slane %v603_v11, %v1331_v63  ;;  %v522_v22 = vmax.f32 %v1300_v34, %v475_v10 }
 0x22b   : > { %v604_v14 = vcombine.low %v532_v12, %v533_v13  ;;  %v663_v23 = vsel %vm655_vm1, %v602_v15, 0.0 }
 0x22c   : > { %v477_v16 = vpop.permute.xlu1 %476  ;;  %v479_v17 = vpop.permute.xlu0 %478  ;;  %v664_v31 = vrot.slane %v663_v23, 4 }
 0x22d   : > { %v618_v19 = vrot.slane %v604_v14, %v1331_v63  ;;  %v523_v20 = vmax.f32 %v1305_v37, %v477_v16  ;;  %v524_v28 = vmax.f32 %v1307_v38, %v479_v17  ;;  %v538_v14 = vld [vmem:[#allocation2] sm:$0xf] }
 0x22e   : > { %v665_v44 = vadd.f32 %v664_v31, %v663_v23 }
 0x22f   : > { %v619_v21 = vcombine.low %v611_v18, %v618_v19  ;;  %v555_v27 = vcombine.low %v522_v22, %v523_v20 }
 0x230   : > { %v481_v24 = vpop.permute.xlu1 %480  ;;  %v499_v25 = vpop.permute.xlu0 %498  ;;  %v666_v54 = vrot.slane %v665_v44, 2 }
 0x231   : > { %v626_v26 = vrot.slane %v619_v21, %v1331_v63  ;;  %v525_v29 = vmax.f32 %v445_v41, %v481_v24  ;;  %v563_v35 = vrot.slane %v555_v27, %v1331_v63  ;;  %v534_v43 = vmax.f32 %v1313_v42, %v499_v25 }
 0x232   : > { %v667_v59 = vadd.f32 %v666_v54, %v665_v44 }
 0x233   : > { %v556_v30 = vcombine.low %v524_v28, %v525_v29  ;;  %v670_v32 = vsel %vm655_vm1, %v626_v26, 0.0 }
 0x234   : > { %v501_v33 = vpop.permute.xlu1 %500  ;;  %v503_v37 = vpop.permute.xlu0 %502  ;;  %v671_v39 = vrot.slane %v670_v32, 4  ;;  %v668_v0 = vrot.slane %v667_v59, 1 }
 0x235   : > { %v570_v36 = vrot.slane %v556_v30, %v1331_v63  ;;  %v535_v34 = vmax.f32 %v1318_v45, %v501_v33  ;;  %v536_v49 = vmax.f32 %v1320_v46, %v503_v37 }
 0x236   : > { %v672_v51 = vadd.f32 %v671_v39, %v670_v32  ;;  %v669_v5 = vadd.f32 %v668_v0, %v667_v59 }
 0x237   : > { %v571_v40 = vcombine.low %v563_v35, %v570_v36  ;;  %v627_v41 = vcombine.low %v534_v43, %v535_v34 }
 0x238   : > { %v505_v47 = vpop.permute.xlu1 %504  ;;  %v673_v57 = vrot.slane %v672_v51, 2  ;;  %v688_v10 = vrot.slane %v669_v5, 7 }
 0x239   : > { %v578_v38 = vrot.slane %v571_v40, %v1331_v63  ;;  %v537_v50 = vmax.f32 %v1326_v48, %v505_v47  ;;  %v635_v55 = vrot.slane %v627_v41, %v1331_v63 }
 0x23a   : > { %v674_v62 = vadd.f32 %v673_v57, %v672_v51 }
 0x23b   : > { %v656_v52 = vsel %vm655_vm1, %v578_v38, 0.0  ;;  %v628_v53 = vcombine.low %v536_v49, %v537_v50 }
 0x23c   : > { %v657_v45 = vrot.slane %v656_v52, 4  ;;  %v675_v4 = vrot.slane %v674_v62, 1 }
 0x23d   : > { %v642_v56 = vrot.slane %v628_v53, %v1331_v63 }
 0x23e   : > { %v658_v42 = vadd.f32 %v657_v45, %v656_v52  ;;  %v676_v9 = vadd.f32 %v675_v4, %v674_v62 }
 0x23f   : > { %v643_v58 = vcombine.low %v635_v55, %v642_v56 }
 0x240   : > { %v659_v60 = vrot.slane %v658_v42, 2  ;;  %v691_v13 = vrot.slane %v676_v9, 6 }
 0x241   : > { %v650_v61 = vrot.slane %v643_v58, %v1331_v63 }
 0x242   : > { %v660_v46 = vadd.f32 %v659_v60, %v658_v42 }
 0x243   : > { %v677_v48 = vsel %vm655_vm1, %v650_v61, 0.0 }
 0x244   : > { %v678_v1 = vrot.slane %v677_v48, 4  ;;  %v661_v2 = vrot.slane %v660_v46, 1 }
 0x246   : > { %v679_v3 = vadd.f32 %v678_v1, %v677_v48  ;;  %v662_v7 = vadd.f32 %v661_v2, %v660_v46 }
 0x248   : > { %v680_v6 = vrot.slane %v679_v3, 2  ;;  %v690_v12 = vsel %vm689_vm2, %v688_v10, %v662_v7 }
 0x249   : > { %v693_v16 = vsel %vm692_vm3, %v691_v13, %v690_v12 }
 0x24a   : > { %v681_v8 = vadd.f32 %v680_v6, %v679_v3 }
 0x24c   : > { %v682_v11 = vrot.slane %v681_v8, 1 }
 0x24e   : > { %v683_v63 = vadd.f32 %v682_v11, %v681_v8 }
 0x24f   : > { %703 = sbr.rel (%p827_p7) target bundleno = 606 (0x25e), region = 36 }
 0x250   : > { %v694_v15 = vrot.slane %v683_v63, 5 }
 0x252   : > { %v696_v17 = vsel %vm695_vm4, %v694_v15, %v693_v16 }
 0x253   : > { %v698_v18 = vadd.f32 %v696_v17, %v538_v14 }
 0x255   : > { %699 = vst.msk [vmem:[#allocation2] sm:$0xf] %vm655_vm1, %v698_v18 }
 0x25c   : > { %v704_v19 = vld [vmem:[#allocation2] sm:$0xf] }
 0x25d   : > { %705 = vst.msk [vmem:[%s191_s26] sm:$0xf] %vm655_vm1, %v704_v19 }
 0x25e PF: > { %s829_s17 = sshll.u32 %s1059_s13, 6  ;;  %s721_s27 = sshll.u32 %s191_s26, 4  ;;  %s722_s27 = int_to_ptr.vmem [resolvable:$true] %s721_s27 }
 0x25f   : > { %s1366_s18 = scalar_lea.hbm %s1427_s1, %s829_s17  ;;  %s707_s12 = scalar_lea.sflag [#allocation5], %s189_s24 }
 0x260   : > { %s949_s19 = scalar_lea.vmem %s722_s27, 64  ;;  %s1085_s15 = smov [#allocation6]  }
 0x261   : > { %p950_p8 = scmp.ne.s32.totalorder %s722_s27, %s949_s19  ;;  %s953_s20 = sshll.u32 %s1085_s15, 4  ;;  %s954_s20 = int_to_ptr.vmem [resolvable:$false] %s953_s20 }
 0x262   : > { %s955_s28 = scalar_lea.vmem %s954_s20, 128  ;;  %p956_p11 = scmp.lt.s32.totalorder %s722_s27, %s954_s20 }
 0x263   : > { %p951_p9 = pnand %p950_p8, %p1189_p12  ;;  %p957_p13 = scmp.lt.s32.totalorder %s955_s28, %s949_s19 }
 0x265   : > { %p952_p10 = pneg %p951_p9  ;;  %p958_p0 = por %p957_p13, %p956_p11 }
 0x267   : > { %p959_p2 = pnand %p958_p0, %p952_p10 }
 0x269   : > { %962 = shalt.err (!%p959_p2)
}
 0x26a   : > { %s963_s13 = scalar_lea.hbm %s1366_s18, 64  ;;  %s967_s26 = scalar_lea.hbm %s1427_s1, 128 }
 0x26b   : > { %p964_p3 = scmp.ne.s32.totalorder %s1366_s18, %s963_s13  ;;  %p968_p5 = scmp.lt.u32.totalorder %s1366_s18, %s1427_s1 }
 0x26c   : > { %p969_p7 = scmp.lt.u32.totalorder %s967_s26, %s963_s13  ;;  %p971_p9 = scmp.lt.u32.totalorder %s963_s13, %s1366_s18 }
 0x26d   : > { %p965_p4 = pnand %p964_p3, %p1189_p12 }
 0x26e   : > { %p970_p8 = por %p969_p7, %p968_p5 }
 0x26f   : > { %p966_p6 = pneg %p965_p4 }
 0x270   : > { %p972_p10 = por %p971_p9, %p970_p8 }
 0x272   : > { %p973_p11 = pnand %p972_p10, %p966_p6 }
 0x274   : > { %976 = shalt.err (!%p973_p11)
}
 0x275   : > { %842 = dma.vmem_to_hbm [thread:$0]  (%p1189_p12), %s722_s27, 64, %s1366_s18, %s707_s12  }
 0x276 PF: > { %p848_p13 = scmp.ge.s32.totalorder %s1071_s16, 2  ;;  %s733_s30 = sand.u32 1, %s1031_s6  }
 0x277   : > { %s734_s22 = scalar_lea.sflag [#allocation5], %s733_s30 }
 0x278   : > { %p845_p0 = pnand %p848_p13, %p1197_p1 }
 0x27a   : > { %1026 = dma.done.wait (!%p845_p0), %s734_s22, 64  }
 0x27b   : > { %1028 = vsyncadd (!%p845_p0), %s734_s22, 4294967232  ;;  %s17_s16 = sadd.s32 1, %s1071_s16   ;;  %s1438_s13 = sld [smem:[#allocation12_spill]] }
 0x27c   : > { %p14_p2 = scmp.ge.s32.totalorder %s17_s16, 6   ;;  %s1439_s4 = sld [smem:[#allocation13_spill]] }
 0x27d   : > { %s1440_s15 = sld [smem:[#allocation14_spill]]  ;;  %s1441_s6 = smov %s1035_s7 }
 0x27e   : > { %s1442_s7 = smov %s1039_s8  ;;  %s1443_s8 = smov %s1184_s2 }
 0x27f   : > { %s1444_s9 = smov %s1047_s10  ;;  %s1445_s10 = smov %s1051_s11 }
 0x280   : > { %s1446_s11 = smov %s1187_s3  ;;  %s1447_s12 = smov %s1063_s14 }
 0x281   :  { %16 = sbr.rel (!%p14_p2) target bundleno = 9 (0x9), region = 82 }
 0x282   : > { %s1448_s14 = smov %s1439_s4 }
 0x288   :  { %739 = vsyncpa [#allocation4], 1 }
 0x289   :  { %741 = vsyncpa [#allocation4 + $0x1], 1 }
 0x28a   :  { %742 = vsyncpa [#allocation5], 1 }
 0x28b   :  { %744 = vsyncpa [#allocation5 + $0x1], 1 }

</bundles_post_ra>
